<compile_context>
chip_gen: v7x
topology: tpu7x:2x2x1
jax: 0.10.0
libtpu: 0.0.40
codegen_flags: <defaults>
</compile_context>

<pallas_src>
import functools

import jax
import jax.numpy as jnp
from jax.experimental import pallas as pl
from jax.experimental.pallas import tpu as pltpu


def _round_up(x, m):
    return (x + m - 1) // m * m


def _cdiv(a, b):
    return (a + b - 1) // b


def _convlstm_kernel(x_ref, w_ref, b_ref, c_ref, hc_ref, *, Hd):
    # x_ref  : (1, RB, Kp)   bf16  im2col rows for this (batch, row-block)
    # w_ref  : (Kp, 4*Hd)    bf16  folded conv weight
    # b_ref  : (1, 4*Hd)     f32   bias
    # c_ref  : (1, RB, Hd)   f32   prev cell rows
    # hc_ref : (1, RB, 2*Hd)       packed [hidden | cell] output
    acc = jnp.dot(x_ref[0], w_ref[...], preferred_element_type=jnp.float32)
    acc = acc + b_ref[...].astype(jnp.float32)            # (RB, 4*Hd)

    # One EUP pass over the gates: sigmoid(x) = 0.5*(1 + tanh(x/2)) on the
    # [i | r | o] lanes, plain tanh on the [g] lanes.
    lane = jax.lax.broadcasted_iota(jnp.int32, acc.shape, 1)
    is_sig = lane < 3 * Hd
    t = jnp.tanh(jnp.where(is_sig, 0.5 * acc, acc))
    act = jnp.where(is_sig, 0.5 * t + 0.5, t)

    in_gate = act[:, 0 * Hd:1 * Hd]
    remember_gate = act[:, 1 * Hd:2 * Hd]
    out_gate = act[:, 2 * Hd:3 * Hd]
    cell_gate = act[:, 3 * Hd:4 * Hd]

    prev_cell = c_ref[0]
    cell = remember_gate * prev_cell + in_gate * cell_gate
    hidden = out_gate * jnp.tanh(cell)

    # Single fused 64-lane store; wrapper splits hidden / cell.
    hc_ref[0] = jnp.concatenate([hidden, cell], axis=-1).astype(hc_ref.dtype)


def convlstm_cell_forward(x_nchw, prev_hidden_nchw, prev_cell_nchw,
                          weight_oikk, bias_o, padding, *, row_block=128):
    """ConvLSTMCell forward.

    Args (PyTorch conventions):
      x_nchw           : (N, Cin_x, H, W)
      prev_hidden_nchw : (N, Hd, H, W)
      prev_cell_nchw   : (N, Hd, H, W)
      weight_oikk      : (4*Hd, Cin_x + Hd, KH, KW)   (nn.Conv2d weight layout)
      bias_o           : (4*Hd,)
      padding          : int spatial padding (must give a 'same' conv)

    Returns: (hidden, cell), each (N, Hd, H, W).
    """
    N, Cx, H, W = x_nchw.shape
    Hd = prev_hidden_nchw.shape[1]
    KH, KW = weight_oikk.shape[2], weight_oikk.shape[3]
    Cin = Cx + Hd
    GD = 4 * Hd
    # 'same' conv is implied by the recurrence (output must match prev_cell's H, W).
    assert H + 2 * padding - KH + 1 == H and W + 2 * padding - KW + 1 == W

    rows = H * W
    RB = _round_up(min(row_block, _round_up(rows, 8)), 8)
    # Keep >= 2 total grid steps so both v7x TensorCores get work.
    if N * _cdiv(rows, RB) < 2 and rows > 8:
        RB = _round_up(_cdiv(rows, 2), 8)
    rows_p = _round_up(rows, RB)

    K = KH * KW * Cin
    Kp = _round_up(K, 128)

    # ---- glue (plain JAX): layout, concat, im2col, weight folding ----
    # TODO(synk): for recurrent rollouts keep hidden/cell in NHWC flat layout between
    # steps and pass x / prev_hidden separately to drop the per-step transposes+concat.
    stacked = jnp.concatenate([x_nchw, prev_hidden_nchw], axis=1)      # (N,Cin,H,W)
    stacked_nhwc = jnp.transpose(stacked, (0, 2, 3, 1))                # (N,H,W,Cin)
    xpad = jnp.pad(stacked_nhwc, ((0, 0), (padding, padding),
                                  (padding, padding), (0, 0)))
    # im2col: one (H, W, Cin) shifted view per tap, folded into the channel axis.
    patches = [xpad[:, kh:kh + H, kw:kw + W, :]
               for kh in range(KH) for kw in range(KW)]
    xcol = jnp.concatenate(patches, axis=-1).reshape(N, rows, K)
    xcol = jnp.pad(xcol, ((0, 0), (0, rows_p - rows), (0, Kp - K)))
    xcol = xcol.astype(jnp.bfloat16)

    # Weight folded to match the patch ordering: index = (kh*KW + kw)*Cin + c.
    w = jnp.transpose(weight_oikk, (2, 3, 1, 0)).reshape(K, GD)        # (K, 4*Hd)
    w = jnp.pad(w, ((0, Kp - K), (0, 0))).astype(jnp.bfloat16)

    b = bias_o.reshape(1, GD).astype(jnp.float32)

    pc = jnp.transpose(prev_cell_nchw, (0, 2, 3, 1)).reshape(N, rows, Hd)
    pc = jnp.pad(pc, ((0, 0), (0, rows_p - rows), (0, 0))).astype(jnp.float32)

    kernel = functools.partial(_convlstm_kernel, Hd=Hd)
    out_dtype = x_nchw.dtype
    grid = (N, rows_p // RB)

    hc = pl.pallas_call(
        kernel,
        out_shape=jax.ShapeDtypeStruct((N, rows_p, 2 * Hd), out_dtype),
        grid_spec=pltpu.PrefetchScalarGridSpec(
            num_scalar_prefetch=0,
            grid=grid,
            in_specs=[
                pl.BlockSpec((1, RB, Kp), lambda n, rb: (n, rb, 0)),
                pl.BlockSpec((Kp, GD), lambda n, rb: (0, 0)),
                pl.BlockSpec((1, GD), lambda n, rb: (0, 0)),
                pl.BlockSpec((1, RB, Hd), lambda n, rb: (n, rb, 0)),
            ],
            out_specs=pl.BlockSpec((1, RB, 2 * Hd), lambda n, rb: (n, rb, 0)),
        ),
        compiler_params=pltpu.CompilerParams(
            dimension_semantics=("parallel", "parallel")),
    )(xcol, w, b, pc)

    # Drop padded rows, split [hidden | cell], return to NCHW.
    hc = hc[:, :rows, :].reshape(N, H, W, 2 * Hd)
    hidden = jnp.transpose(hc[..., :Hd], (0, 3, 1, 2))
    cell = jnp.transpose(hc[..., Hd:], (0, 3, 1, 2))
    return hidden, cell


def _reference_forward(x, prev_h, prev_c, w, b, padding):
    """Pure-JAX f32 reference using XLA conv (NCHW, matching PyTorch semantics)."""
    stacked = jnp.concatenate([x, prev_h], axis=1)
    gates = jax.lax.conv_general_dilated(
        stacked, w, window_strides=(1, 1),
        padding=[(padding, padding), (padding, padding)],
        dimension_numbers=("NCHW", "OIHW", "NCHW"))
    gates = gates + b[None, :, None, None]
    Hd = prev_h.shape[1]
    i = jax.nn.sigmoid(gates[:, 0 * Hd:1 * Hd])
    r = jax.nn.sigmoid(gates[:, 1 * Hd:2 * Hd])
    o = jax.nn.sigmoid(gates[:, 2 * Hd:3 * Hd])
    g = jnp.tanh(gates[:, 3 * Hd:4 * Hd])
    c = r * prev_c + i * g
    h = o * jnp.tanh(c)
    return h, c


if __name__ == "__main__":
    # Module config (mirrors ConvLSTMCell(input_size, hidden_size, kernel_size, padding)).
    N, Cx, H, W = 2, 4, 16, 16
    Hd = 32
    K = 3
    padding = 1
    Cin = Cx + Hd

    key = jax.random.PRNGKey(0)
    kx, kh, kc, kw, kb = jax.random.split(key, 5)

    x = jax.random.normal(kx, (N, Cx, H, W), jnp.float32)
    prev_hidden = jax.random.normal(kh, (N, Hd, H, W), jnp.float32)
    prev_cell = jax.random.normal(kc, (N, Hd, H, W), jnp.float32)

    # xavier_normal_(gain=0.02): std = gain * sqrt(2 / (fan_in + fan_out))
    fan_in = Cin * K * K
    fan_out = 4 * Hd * K * K
    std = 0.02 * (2.0 / (fan_in + fan_out)) ** 0.5
    weight = std * jax.random.normal(kw, (4 * Hd, Cin, K, K), jnp.float32)
    # nn.Conv2d default bias init: U(-1/sqrt(fan_in), 1/sqrt(fan_in)).
    bound = 1.0 / (fan_in ** 0.5)
    bias = jax.random.uniform(kb, (4 * Hd,), jnp.float32, -bound, bound)

    fwd = jax.jit(convlstm_cell_forward, static_argnames=("padding", "row_block"))
    hidden, cell = fwd(x, prev_hidden, prev_cell, weight, bias, padding=padding)
    jax.block_until_ready((hidden, cell))

    h_ref, c_ref = _reference_forward(x, prev_hidden, prev_cell, weight, bias,
                                      padding)
    # bf16 MXU operands (f32 accumulate) -> loosened tolerance vs the f32 reference.
    assert jnp.allclose(hidden, h_ref, atol=1e-2, rtol=1e-2)
    assert jnp.allclose(cell, c_ref, atol=1e-2, rtol=1e-2)

    print("KERNEL_OK")
</pallas_src>

<mosaic_0001>
module attributes {stable_mosaic.version = 11 : i64} {
  func.func @_convlstm_kernel(%arg0: i32, %arg1: i32, %arg2: memref<1x128x384xbf16, #tpu.memory_space<vmem>>, %arg3: memref<384x128xbf16, #tpu.memory_space<vmem>>, %arg4: memref<1x128xf32, #tpu.memory_space<vmem>>, %arg5: memref<1x128x32xf32, #tpu.memory_space<vmem>>, %arg6: memref<1x128x64xf32, #tpu.memory_space<vmem>>) attributes {dimension_semantics = [#tpu.dimension_semantics<parallel>, #tpu.dimension_semantics<parallel>], iteration_bounds = array<i64: 2, 2>, scalar_prefetch = 0 : i64, scratch_operands = 0 : i64, tpu.core_type = #tpu.core_type<tc>, window_params = [{transform_indices = @transform_0, window_bounds = array<i64: 1, 128, 384>}, {pipeline_mode = #tpu.pipeline_mode<synchronous>, transform_indices = @transform_1, window_bounds = array<i64: 384, 128>}, {pipeline_mode = #tpu.pipeline_mode<synchronous>, transform_indices = @transform_2, window_bounds = array<i64: 1, 128>}, {transform_indices = @transform_3, window_bounds = array<i64: 1, 128, 32>}, {transform_indices = @transform_4, window_bounds = array<i64: 1, 128, 64>}]} {
    %c0 = arith.constant 0 : index
    %c0_0 = arith.constant 0 : index
    %c0_1 = arith.constant 0 : index
    %0 = vector.load %arg2[%c0, %c0_0, %c0_1] : memref<1x128x384xbf16, #tpu.memory_space<vmem>>, vector<1x128x384xbf16>
    %1 = vector.shape_cast %0 : vector<1x128x384xbf16> to vector<128x384xbf16>
    %c0_2 = arith.constant 0 : index
    %c0_3 = arith.constant 0 : index
    %2 = vector.load %arg3[%c0_2, %c0_3] : memref<384x128xbf16, #tpu.memory_space<vmem>>, vector<384x128xbf16>
    %cst = arith.constant dense<0.000000e+00> : vector<128x128xf32>
    %3 = tpu.matmul %1, %2, %cst {dimension_numbers = #tpu.dot_dimension_numbers<[1], [0], [0], [1], [0, 0, 1, 1], [], []>} : vector<128x384xbf16>, vector<384x128xbf16>, vector<128x128xf32> -> vector<128x128xf32>
    %c0_4 = arith.constant 0 : index
    %c0_5 = arith.constant 0 : index
    %4 = vector.load %arg4[%c0_4, %c0_5] : memref<1x128xf32, #tpu.memory_space<vmem>>, vector<1x128xf32>
    %5 = vector.broadcast %4 : vector<1x128xf32> to vector<128x128xf32>
    %6 = arith.addf %3, %5 : vector<128x128xf32>
    %7 = tpu.iota {dimensions = array<i32: 1>} : vector<128x128xi32>
    %c96_i32 = arith.constant 96 : i32
    %8 = vector.broadcast %c96_i32 : i32 to vector<128x128xi32>
    %9 = arith.cmpi slt, %7, %8 : vector<128x128xi32>
    %cst_6 = arith.constant 5.000000e-01 : f32
    %10 = vector.broadcast %cst_6 : f32 to vector<128x128xf32>
    %11 = arith.mulf %10, %6 : vector<128x128xf32>
    %12 = arith.select %9, %11, %6 : vector<128x128xi1>, vector<128x128xf32>
    %13 = math.tanh %12 : vector<128x128xf32>
    %cst_7 = arith.constant 5.000000e-01 : f32
    %14 = vector.broadcast %cst_7 : f32 to vector<128x128xf32>
    %15 = arith.mulf %14, %13 : vector<128x128xf32>
    %cst_8 = arith.constant 5.000000e-01 : f32
    %16 = vector.broadcast %cst_8 : f32 to vector<128x128xf32>
    %17 = arith.addf %15, %16 : vector<128x128xf32>
    %18 = arith.select %9, %17, %13 : vector<128x128xi1>, vector<128x128xf32>
    %19 = vector.extract_strided_slice %18 {offsets = [0, 0], sizes = [128, 32], strides = [1, 1]} : vector<128x128xf32> to vector<128x32xf32>
    %20 = vector.extract_strided_slice %18 {offsets = [0, 32], sizes = [128, 32], strides = [1, 1]} : vector<128x128xf32> to vector<128x32xf32>
    %21 = vector.extract_strided_slice %18 {offsets = [0, 64], sizes = [128, 32], strides = [1, 1]} : vector<128x128xf32> to vector<128x32xf32>
    %22 = vector.extract_strided_slice %18 {offsets = [0, 96], sizes = [128, 32], strides = [1, 1]} : vector<128x128xf32> to vector<128x32xf32>
    %c0_9 = arith.constant 0 : index
    %c0_10 = arith.constant 0 : index
    %c0_11 = arith.constant 0 : index
    %23 = vector.load %arg5[%c0_9, %c0_10, %c0_11] : memref<1x128x32xf32, #tpu.memory_space<vmem>>, vector<1x128x32xf32>
    %24 = vector.shape_cast %23 : vector<1x128x32xf32> to vector<128x32xf32>
    %25 = arith.mulf %20, %24 : vector<128x32xf32>
    %26 = arith.mulf %19, %22 : vector<128x32xf32>
    %27 = arith.addf %25, %26 : vector<128x32xf32>
    %28 = math.tanh %27 : vector<128x32xf32>
    %29 = arith.mulf %21, %28 : vector<128x32xf32>
    %30 = tpu.concatenate %29, %27 in 1 : vector<128x32xf32>, vector<128x32xf32> -> vector<128x64xf32>
    %c0_12 = arith.constant 0 : index
    %c0_13 = arith.constant 0 : index
    %c0_14 = arith.constant 0 : index
    %31 = vector.load %arg6[%c0_12, %c0_13, %c0_14] : memref<1x128x64xf32, #tpu.memory_space<vmem>>, vector<1x128x64xf32>
    %32 = vector.shape_cast %31 : vector<1x128x64xf32> to vector<128x64xf32>
    %33 = vector.shape_cast %30 : vector<128x64xf32> to vector<1x128x64xf32>
    tpu.vector_store %arg6[%c0_12, %c0_13, %c0_14], %33 {strides = array<i32>} : memref<1x128x64xf32, #tpu.memory_space<vmem>>, vector<1x128x64xf32>,
    return
  }
  func.func @transform_0(%arg0: i32, %arg1: i32) -> (i32, i32, i32) {
    %c0_i32 = arith.constant 0 : i32
    %c0_i32_0 = arith.constant 0 : i32
    return %arg0, %arg1, %c0_i32 : i32, i32, i32
  }
  func.func @transform_1(%arg0: i32, %arg1: i32) -> (i32, i32) {
    %c0_i32 = arith.constant 0 : i32
    %c0_i32_0 = arith.constant 0 : i32
    %c0_i32_1 = arith.constant 0 : i32
    return %c0_i32, %c0_i32_0 : i32, i32
  }
  func.func @transform_2(%arg0: i32, %arg1: i32) -> (i32, i32) {
    %c0_i32 = arith.constant 0 : i32
    %c0_i32_0 = arith.constant 0 : i32
    %c0_i32_1 = arith.constant 0 : i32
    return %c0_i32, %c0_i32_0 : i32, i32
  }
  func.func @transform_3(%arg0: i32, %arg1: i32) -> (i32, i32, i32) {
    %c0_i32 = arith.constant 0 : i32
    %c0_i32_0 = arith.constant 0 : i32
    return %arg0, %arg1, %c0_i32 : i32, i32, i32
  }
  func.func @transform_4(%arg0: i32, %arg1: i32) -> (i32, i32, i32) {
    %c0_i32 = arith.constant 0 : i32
    %c0_i32_0 = arith.constant 0 : i32
    return %arg0, %arg1, %c0_i32 : i32, i32, i32
  }
}

</mosaic_0001>

<bundles_post_ra>
// kernel: convlstm_cell_forward.1
= control target key start
LH: loop header
LB: loop body
LE: loop exit
PB: predicated region body
PF: predicated region fallthrough
CT: control target
= control target key end

     0   :  { %s1897_s15 = smov 0   ;;  %s1899_s16 = smov 0   ;;  %s2503_s0 = inlined_call_operand.vmem [shape: bf16[2,256,384], index: 0, kind: input, shape index: {}]   ;;  %s2504_s1 = inlined_call_operand.vmem [shape: bf16[384,128], index: 1, kind: input, shape index: {}]   ;;  %s2505_s2 = inlined_call_operand.vmem [shape: f32[1,128], index: 2, kind: input, shape index: {}]   ;;  %s2506_s3 = inlined_call_operand.vmem [shape: f32[2,256,32], index: 3, kind: input, shape index: {}]   ;;  %s2507_s4 = inlined_call_operand.vmem [shape: f32[2,256,64], index: 4, kind: output, shape index: {}]  }
   0x1   :  { %s1901_s17 = smov 0   ;;  %s1903_s18 = smov 0  }
   0x2   :  { %s1905_s19 = smov 0  }
   0x3 LB: > { %s23_s20 = sadd.s32 1, %s1860_s17  ;;  %s26_s21 = sadd.s32 1, %s1864_s18  ;;  %s1868_s19 = sphi %s1905_s19, %s14_s19   ;;  %s1864_s18 = sphi %s1903_s18, %s2511_s18   ;;  %s1860_s17 = sphi %s1901_s17, %s2510_s17   ;;  %s1856_s16 = sphi %s1899_s16, %s2509_s16   ;;  %s1852_s15 = sphi %s1897_s15, %s2508_s15  }
   0x4   : > { %p24_p0 = scmp.ge.s32.totalorder %s23_s20, 2  ;;  %p1494_p1 = scmp.ge.s32.totalorder %s1868_s19, 1 }
   0x5   : > { %p201_p2 = scmp.lt.s32.totalorder %s1868_s19, 5 }
   0x6   : > { %s2513_s20 = smov (%p24_p0, %s23_s20), 0  ;;  %s2515_s21 = smov (!%p24_p0, %s26_s21), %s1864_s18 }
   0x7   : > { %p202_p3 = pnand %p1494_p1, %p201_p2  ;;  %p28_p4 = scmp.ge.s32.totalorder %s2515_s21, 2 }
   0x8   : > { %v1710_v0 = vld [vmem:[%s2504_s1 + $0x40] sm:$0xff] (!%p202_p3)   ;;  %s1495_s24 = sshll.u32 (!%p202_p3), %s1852_s15, 4  ;;  %v1712_v2 = vld [vmem:[%s2504_s1 + $0x48] sm:$0xff] (!%p202_p3)   ;;  %p246_p5 = scmp.lt.s32.totalorder (!%p202_p3), %s1856_s16, 1  ;;  %v1715_v5 = vld [vmem:[%s2504_s1 + $0x50] sm:$0xff] (!%p202_p3)   ;;  %v830_v50 = vlaneseq (!%p202_p3)  ;;  %vm1345_vm1 = vcmask (!%p202_p3), 261120  }
   0x9   : > { %s2517_s21 = smov (%p28_p4, %s2515_s21), 0  ;;  %205 = sbr.rel (%p202_p3) target bundleno = 817 (0x331), region = 36 }
   0xa   : > { %v1711_v1 = vld [vmem:[%s2504_s1] sm:$0xff] (!%p202_p3)   ;;  %1554 = vmatprep.subr.bf16.mxu0 (!%p202_p3), %v1710_v0  ;;  %p248_p6 = scmp.lt.s32.totalorder (!%p202_p3), %s1495_s24, 31  ;;  %v1714_v4 = vld [vmem:[%s2504_s1 + $0x8] sm:$0xff] (!%p202_p3)   ;;  %v1717_v7 = vld [vmem:[%s2504_s1 + $0x10] sm:$0xff] (!%p202_p3)   ;;  %s1870_s25 = smov (!%p202_p3), 32   ;;  %v2062_v58 = vand.u32 (!%p202_p3), 127, %v830_v50 }
   0xb   : > { %1555 = vmatpush3.bf16.msra.mxu0 (!%p202_p3), %v1711_v1  ;;  %v1713_v3 = vld [vmem:[%s2504_s1 + $0x80] sm:$0xff] (!%p202_p3)   ;;  %v1716_v6 = vld [vmem:[%s2504_s1 + $0x88] sm:$0xff] (!%p202_p3)   ;;  %v1718_v8 = vld [vmem:[%s2504_s1 + $0x58] sm:$0xff] (!%p202_p3)   ;;  %s1871_s28 = smov (!%p202_p3), 64   ;;  %vm1362_vm2 = vcmask (!%p202_p3), 523264  }
   0xc   : > { %1556 = vmatprep.subr.bf16.mxu0 (!%p202_p3), %v1712_v2  ;;  %1634 = vmatprep.subr.bf16.mxu1 (!%p202_p3), %v1713_v3  ;;  %v1719_v9 = vld [vmem:[%s2504_s1 + $0x90] sm:$0xff] (!%p202_p3)   ;;  %v1720_v10 = vld [vmem:[%s2504_s1 + $0x18] sm:$0xff] (!%p202_p3)   ;;  %v1721_v11 = vld [vmem:[%s2504_s1 + $0x60] sm:$0xff] (!%p202_p3)   ;;  %vm832_vm0 = vcmp.lt.s32.totalorder (!%p202_p3), %v2062_v58, 96 }
   0xd   : > { %1635 = vmatpush3.bf16.msra.mxu1 (!%p202_p3), %v1713_v3  ;;  %v1722_v12 = vld [vmem:[%s2504_s1 + $0x98] sm:$0xff] (!%p202_p3)   ;;  %v1723_v13 = vld [vmem:[%s2504_s1 + $0x20] sm:$0xff] (!%p202_p3)   ;;  %v1724_v15 = vld [vmem:[%s2504_s1 + $0x68] sm:$0xff] (!%p202_p3)  }
   0xe   : > { %1636 = vmatprep.subr.bf16.mxu1 (!%p202_p3), %v1716_v6  ;;  %v1725_v14 = vld [vmem:[%s2504_s1 + $0xa0] sm:$0xff] (!%p202_p3)   ;;  %v1726_v16 = vld [vmem:[%s2504_s1 + $0x28] sm:$0xff] (!%p202_p3)   ;;  %v1727_v18 = vld [vmem:[%s2504_s1 + $0x70] sm:$0xff] (!%p202_p3)  }
   0xf   : > { %1557 = vmatpush3.bf16.msra.mxu0 (!%p202_p3), %v1714_v4  ;;  %v1728_v17 = vld [vmem:[%s2504_s1 + $0xa8] sm:$0xff] (!%p202_p3)   ;;  %v1729_v19 = vld [vmem:[%s2504_s1 + $0x30] sm:$0xff] (!%p202_p3)   ;;  %v1730_v20 = vld [vmem:[%s2504_s1 + $0x78] sm:$0xff] (!%p202_p3)  }
  0x10   : > { %s2519_s16 = smov (!%p246_p5, %s1856_s16), 1  ;;  %s2521_s24 = smov (!%p248_p6, %s1495_s24), 31  ;;  %1558 = vmatprep.subr.bf16.mxu0 %v1715_v5  ;;  %v1731_v21 = vld [vmem:[%s2504_s1 + $0xb0] sm:$0xff]   ;;  %v1732_v23 = vld [vmem:[%s2504_s1 + $0x38] sm:$0xff]   ;;  %v2060_v53 = vld [vmem:[%s2505_s2] ss:$0 sm:$0xff] }
  0x11   : > { %1637 = vmatpush3.bf16.msra.mxu1 %v1716_v6  ;;  %s1667_s26 = smul.u32 96, %s2519_s16  ;;  %v1736_v25 = vld [vmem:[%s2504_s1 + $0xb8] sm:$0xff]   ;;  %s1498_s14 = sshll.u32 %s2519_s16, 5 }
  0x12   : > { %1638 = vmatprep.subr.bf16.mxu1 %v1719_v9  ;;  %s1666_s29 = smul.u32 3, %s2521_s24 }
  0x13   : > { %1559 = vmatpush3.bf16.msra.mxu0 %v1717_v7 }
  0x14   : > { %1560 = vmatprep.subr.bf16.mxu0 %v1718_v8  ;;  %s252_s10 = sadd.s32 %s1667_s26, %s1666_s29 }
  0x15   : > { %1639 = vmatpush3.bf16.msra.mxu1 %v1719_v9  ;;  %s1496_s15 = sshll.u32 %s252_s10, 2 }
  0x16   : > { %1640 = vmatprep.subr.bf16.mxu1 %v1722_v12  ;;  %s2003_s5 = scalar_lea.vmem %s2503_s0, %s1496_s15  ;;  %s2024_s15 = sadd.s32 %s1498_s14, %s2521_s24 }
  0x17   : > { %1561 = vmatpush3.bf16.msra.mxu0 %v1720_v10  ;;  %v1735_v22 = vld [vmem:[%s2003_s5 + $0x4] ss:$12 sps:$4 sm:$0xff]   ;;  %v1737_v24 = vld [vmem:[%s2003_s5 + $0x8] ss:$12 sps:$4 sm:$0xff]   ;;  %v1733_v26 = vld [vmem:[%s2003_s5] ss:$12 sps:$4 sm:$0xff]  }
  0x18   : > { %1562 = vmatprep.subr.bf16.mxu0 %v1721_v11  ;;  %668 = vmatprep.mubr.bf16.mxu0 %v1735_v22  ;;  %v1739_v27 = vld [vmem:[%s2003_s5 + $0x1c] ss:$12 sps:$4 sm:$0xff]   ;;  %v1738_v28 = vld [vmem:[%s2003_s5 + $0x20] ss:$12 sps:$4 sm:$0xff]   ;;  %v1745_v29 = vld [vmem:[%s2003_s5 + $0x38] ss:$12 sps:$4 sm:$0xff]  }
  0x19   : > { %1641 = vmatpush3.bf16.msra.mxu1 %v1722_v12  ;;  %1650 = vmatprep.mubr.bf16.mxu1 %v1737_v24  ;;  %s1499_s22 = sshll.u32 %s2024_s15, 3  ;;  %v1741_v30 = vld [vmem:[%s2003_s5 + $0x18] ss:$12 sps:$4 sm:$0xff]   ;;  %v1742_v31 = vld [vmem:[%s2003_s5 + $0x34] ss:$12 sps:$4 sm:$0xff]  }
  0x1a   : > { %1642 = vmatprep.subr.bf16.mxu1 %v1725_v14  ;;  %s2035_s24 = scalar_lea.vmem %s2506_s3, %s1499_s22  ;;  %v1746_v32 = vld [vmem:[%s2003_s5 + $0x50] ss:$12 sps:$4 sm:$0xff]   ;;  %v1753_v33 = vld [vmem:[%s2003_s5 + $0x68] ss:$12 sps:$4 sm:$0xff]   ;;  %v1747_v37 = vld [vmem:[%s2003_s5 + $0x4c] ss:$12 sps:$4 sm:$0xff]  }
  0x1b   : > { %1563 = vmatpush3.bf16.msra.mxu0 %v1723_v13  ;;  %v929_v34 = vld [vmem:[%s2035_s24] sm:$0xff]  ;;  %v930_v35 = vld [vmem:[%s2035_s24 + $0x8] sm:$0xff]  ;;  %v1744_v36 = vld [vmem:[%s2003_s5 + $0x30] ss:$12 sps:$4 sm:$0xff]  }
  0x1c   : > { %1564 = vmatprep.subr.bf16.mxu0 %v1724_v15  ;;  %961 = vrot.lane.b32.xlu0 %v929_v34, %s1870_s25  ;;  %v1754_v38 = vld [vmem:[%s2003_s5 + $0x80] ss:$12 sps:$4 sm:$0xff]   ;;  %v1761_v39 = vld [vmem:[%s2003_s5 + $0x98] ss:$12 sps:$4 sm:$0xff]   ;;  %v1749_v40 = vld [vmem:[%s2003_s5 + $0x48] ss:$12 sps:$4 sm:$0xff]  }
  0x1d   : > { %1643 = vmatpush3.bf16.msra.mxu1 %v1725_v14  ;;  %963 = vrot.lane.b32.xlu1 %v930_v35, %s1870_s25  ;;  %v1750_v41 = vld [vmem:[%s2003_s5 + $0x64] ss:$12 sps:$4 sm:$0xff]   ;;  %v1752_v43 = vld [vmem:[%s2003_s5 + $0x60] ss:$12 sps:$4 sm:$0xff]   ;;  %v1755_v44 = vld [vmem:[%s2003_s5 + $0x7c] ss:$12 sps:$4 sm:$0xff]  }
  0x1e   : > { %1644 = vmatprep.subr.bf16.mxu1 %v1728_v17  ;;  %v1762_v42 = vld [vmem:[%s2003_s5 + $0xb0] ss:$12 sps:$4 sm:$0xff]   ;;  %v1757_v45 = vld [vmem:[%s2003_s5 + $0x78] ss:$12 sps:$4 sm:$0xff]   ;;  %v1758_v46 = vld [vmem:[%s2003_s5 + $0x94] ss:$12 sps:$4 sm:$0xff]  }
  0x1f   : > { %1565 = vmatpush3.bf16.msra.mxu0 %v1726_v16  ;;  %v1760_v47 = vld [vmem:[%s2003_s5 + $0x90] ss:$12 sps:$4 sm:$0xff]   ;;  %v1763_v48 = vld [vmem:[%s2003_s5 + $0xac] ss:$12 sps:$4 sm:$0xff]   ;;  %v1765_v49 = vld [vmem:[%s2003_s5 + $0xa8] ss:$12 sps:$4 sm:$0xff]   ;;  %s2422_s5 = scalar_lea.vmem %s2507_s4, %s1499_s22 }
  0x20   : > { %1566 = vmatprep.subr.bf16.mxu0 %v1727_v18  ;;  %v935_v58 = vld [vmem:[%s2035_s24 + $0x30] sm:$0xff] }
  0x21   : > { %1645 = vmatpush3.bf16.msra.mxu1 %v1728_v17 }
  0x22   : > { %1646 = vmatprep.subr.bf16.mxu1 %v1731_v21 }
  0x23   : > { %1567 = vmatpush3.bf16.msra.mxu0 %v1729_v19 }
  0x24   : > { %1568 = vmatprep.subr.bf16.mxu0 %v1730_v20 }
  0x25   : > { %1647 = vmatpush3.bf16.msra.mxu1 %v1731_v21 }
  0x26   : > { %1648 = vmatprep.subr.bf16.mxu1 %v1736_v25 }
  0x27   : > { %1569 = vmatpush3.bf16.msra.mxu0 %v1732_v23 }
  0x29   : > { %1649 = vmatpush3.bf16.msra.mxu1 %v1736_v25 }
  0x2a   : > { %669 = vmatmul.mubr.bf16.vlgmr.msra.gmra.mrb[0].mxu0 %v1733_v26 }
  0x2b   : > { %676 = vmatprep.mubr.bf16.mxu0 %v1739_v27 }
  0x2c   : > { %1651 = vmatmul.mubr.bf16.vlgmr.msra.gmra.mrb[0].mxu1 %v1738_v28 }
  0x2d   : > { %1654 = vmatprep.mubr.bf16.mxu1 %v1745_v29 }
  0x32   : > { %677 = vmatmul.mubr.bf16.gmra.mrb[4].mxu0 %v1741_v30 }
  0x33   : > { %684 = vmatprep.mubr.bf16.mxu0 %v1742_v31 }
  0x34   : > { %1655 = vmatmul.mubr.bf16.gmra.mrb[4].mxu1 %v1746_v32 }
  0x35   : > { %1658 = vmatprep.mubr.bf16.mxu1 %v1753_v33 }
  0x3a   : > { %685 = vmatmul.mubr.bf16.gmra.mrb[8].mxu0 %v1744_v36 }
  0x3b   : > { %692 = vmatprep.mubr.bf16.mxu0 %v1747_v37 }
  0x3c   : > { %1659 = vmatmul.mubr.bf16.gmra.mrb[8].mxu1 %v1754_v38 }
  0x3d   : > { %1662 = vmatprep.mubr.bf16.mxu1 %v1761_v39 }
  0x42   : > { %693 = vmatmul.mubr.bf16.gmra.mrb[12].mxu0 %v1749_v40 }
  0x43   : > { %700 = vmatprep.mubr.bf16.mxu0 %v1750_v41 }
  0x44   : > { %1663 = vmatmul.mubr.bf16.gmra.mrb[12].mxu1 %v1762_v42 }
  0x4a   : > { %701 = vmatmul.mubr.bf16.gmra.mrb[16].mxu0 %v1752_v43 }
  0x4b   : > { %708 = vmatprep.mubr.bf16.mxu0 %v1755_v44 }
  0x52   : > { %709 = vmatmul.mubr.bf16.gmra.mrb[20].mxu0 %v1757_v45 }
  0x53   : > { %716 = vmatprep.mubr.bf16.mxu0 %v1758_v46 }
  0x5a   : > { %717 = vmatmul.mubr.bf16.gmra.mrb[24].mxu0 %v1760_v47 }
  0x5b   : > { %724 = vmatprep.mubr.bf16.mxu0 %v1763_v48 }
  0x62   : > { %725 = vmatmul.mubr.bf16.gmra.mrb[28].mxu0 %v1765_v49 }
  0xfd   : > { %v1570_v51 = vpop.f32.mrb[0].mxu0 }
  0xfe   : > { %v1571_v52 = vpop.f32.mrb[1].mxu0 }
  0xff   : > { %v1572_v54 = vadd.f32 %v1571_v52, %v1570_v51  ;;  %v1573_v55 = vpop.f32.mrb[2].mxu0  ;;  %v1652_v57 = vpop.f32.mrb[0].mxu1 }
 0x100   : > { %v1574_v56 = vpop.f32.mrb[3].mxu0  ;;  %v767_v61 = vpop.f32.mrb[1].mxu1 }
 0x101   : > { %v1575_v59 = vadd.f32 %v1574_v56, %v1573_v55  ;;  %v671_v60 = vadd.f32 %v1572_v54, %v2060_v53  ;;  %v1653_v62 = vpop.f32.mrb[2].mxu1 }
 0x102   : > { %v770_v1 = vpop.f32.mrb[3].mxu1 }
 0x103   : > { %v768_v63 = vadd.f32 %v767_v61, %v671_v60  ;;  %v674_v0 = vadd.f32 %v1575_v59, %v2060_v53 }
 0x105   : > { %v833_v2 = vmul.f32 0.5, %v768_v63  ;;  %v771_v3 = vadd.f32 %v770_v1, %v674_v0  ;;  %v1576_v4 = vpop.f32.mrb[4].mxu0 }
 0x106   : > { %v1577_v5 = vpop.f32.mrb[5].mxu0 }
 0x107   : > { %v849_v6 = vsel %vm832_vm0, %v833_v2, %v768_v63  ;;  %v834_v7 = vmul.f32 0.5, %v771_v3  ;;  %v1578_v8 = vadd.f32 %v1577_v5, %v1576_v4  ;;  %v1579_v9 = vpop.f32.mrb[6].mxu0  ;;  %v1656_v11 = vpop.f32.mrb[4].mxu1 }
 0x108   : > { %1766 = vtanh.f32 %v849_v6  ;;  %v1580_v10 = vpop.f32.mrb[7].mxu0  ;;  %v783_v15 = vpop.f32.mrb[5].mxu1 }
 0x109   : > { %v850_v12 = vsel %vm832_vm0, %v834_v7, %v771_v3  ;;  %v679_v13 = vadd.f32 %v1578_v8, %v2060_v53  ;;  %v1581_v14 = vadd.f32 %v1580_v10, %v1579_v9  ;;  %v1657_v16 = vpop.f32.mrb[6].mxu1 }
 0x10a   : > { %1768 = vtanh.f32 %v850_v12  ;;  %v786_v19 = vpop.f32.mrb[7].mxu1 }
 0x10b   : > { %v776_v17 = vadd.f32 %v1652_v57, %v679_v13  ;;  %v682_v18 = vadd.f32 %v1581_v14, %v2060_v53 }
 0x10d   : > { %v835_v20 = vmul.f32 0.5, %v776_v17  ;;  %v779_v21 = vadd.f32 %v1653_v62, %v682_v18  ;;  %v1582_v22 = vpop.f32.mrb[8].mxu0 }
 0x10e   : > { %v1583_v23 = vpop.f32.mrb[9].mxu0 }
 0x10f   : > { %v851_v24 = vsel %vm832_vm0, %v835_v20, %v776_v17  ;;  %v836_v25 = vmul.f32 0.5, %v779_v21  ;;  %v1584_v26 = vadd.f32 %v1583_v23, %v1582_v22  ;;  %v1585_v27 = vpop.f32.mrb[10].mxu0  ;;  %v2075_v29 = vpop.f32.mrb[8].mxu1 }
 0x110   : > { %1770 = vtanh.f32 %v851_v24  ;;  %v1586_v28 = vpop.f32.mrb[11].mxu0  ;;  %v799_v33 = vpop.f32.mrb[9].mxu1 }
 0x111   : > { %v852_v30 = vsel %vm832_vm0, %v836_v25, %v779_v21  ;;  %v1587_v31 = vadd.f32 %v1586_v28, %v1585_v27  ;;  %v687_v32 = vadd.f32 %v1584_v26, %v2060_v53  ;;  %v2080_v35 = vpop.f32.mrb[10].mxu1 }
 0x112   : > { %v1767_v34 = vpop.eup %1766  ;;  %1772 = vtanh.f32 %v852_v30  ;;  %v802_v39 = vpop.f32.mrb[11].mxu1 }
 0x113   : > { %v784_v36 = vadd.f32 %v783_v15, %v687_v32  ;;  %v690_v37 = vadd.f32 %v1587_v31, %v2060_v53  ;;  %v881_v38 = vmul.f32 0.5, %v1767_v34 }
 0x114   : > { %v1769_v40 = vpop.eup %1768 }
 0x115   : > { %v837_v41 = vmul.f32 0.5, %v784_v36  ;;  %v787_v42 = vadd.f32 %v786_v19, %v690_v37  ;;  %v1588_v43 = vpop.f32.mrb[12].mxu0  ;;  %v897_v44 = vadd.f32 0.5, %v881_v38  ;;  %v882_v45 = vmul.f32 0.5, %v1769_v40 }
 0x116   : > { %v1589_v46 = vpop.f32.mrb[13].mxu0 }
 0x117   : > { %v853_v47 = vsel %vm832_vm0, %v837_v41, %v784_v36  ;;  %v838_v48 = vmul.f32 0.5, %v787_v42  ;;  %v1590_v49 = vadd.f32 %v1589_v46, %v1588_v43  ;;  %v2087_v50 = vsel %vm832_vm0, %v897_v44, %v1767_v34  ;;  %v1591_v51 = vpop.f32.mrb[14].mxu0  ;;  %v2091_v55 = vpop.f32.mrb[12].mxu1 }
 0x118   : > { %1774 = vtanh.f32 %v853_v47  ;;  %v1592_v52 = vpop.f32.mrb[15].mxu0  ;;  %1041 = vrot.lane.b32.xlu0 %v2087_v50, %s1870_s25  ;;  %v898_v54 = vadd.f32 0.5, %v882_v45  ;;  %v2096_v60 = vpop.f32.mrb[13].mxu1 }
 0x119   : > { %v854_v56 = vsel %vm832_vm0, %v838_v48, %v787_v42  ;;  %v695_v57 = vadd.f32 %v1590_v49, %v2060_v53  ;;  %v1593_v59 = vadd.f32 %v1592_v52, %v1591_v51  ;;  %v2098_v62 = vpop.f32.mrb[14].mxu1 }
 0x11a   : > { %v1771_v61 = vpop.eup %1770  ;;  %1776 = vtanh.f32 %v854_v56  ;;  %v2103_v1 = vsel %vm832_vm0, %v898_v54, %v1769_v40  ;;  %v2105_v3 = vpop.f32.mrb[15].mxu1 }
 0x11b   : > { %v792_v63 = vadd.f32 %v1656_v11, %v695_v57  ;;  %v698_v0 = vadd.f32 %v1593_v59, %v2060_v53  ;;  %v883_v2 = vmul.f32 0.5, %v1771_v61 }
 0x11c   : > { %v1773_v4 = vpop.eup %1772  ;;  %1043 = vrot.lane.b32.xlu0 %v2103_v1, %s1870_s25 }
 0x11d   : > { %v839_v5 = vmul.f32 0.5, %v792_v63  ;;  %v795_v6 = vadd.f32 %v1657_v16, %v698_v0  ;;  %v1594_v7 = vpop.f32.mrb[16].mxu0  ;;  %v899_v8 = vadd.f32 0.5, %v883_v2  ;;  %v884_v9 = vmul.f32 0.5, %v1773_v4 }
 0x11e   : > { %v1595_v10 = vpop.f32.mrb[17].mxu0 }
 0x11f   : > { %v855_v11 = vsel %vm832_vm0, %v839_v5, %v792_v63  ;;  %v840_v12 = vmul.f32 0.5, %v795_v6  ;;  %v1596_v13 = vadd.f32 %v1595_v10, %v1594_v7  ;;  %v1597_v14 = vpop.f32.mrb[18].mxu0  ;;  %v2113_v15 = vsel %vm832_vm0, %v899_v8, %v1771_v61 }
 0x120   : > { %1778 = vtanh.f32 %v855_v11  ;;  %v1598_v17 = vpop.f32.mrb[19].mxu0  ;;  %1045 = vrot.lane.b32.xlu1 %v2113_v15, %s1870_s25  ;;  %v900_v16 = vadd.f32 0.5, %v884_v9 }
 0x121   : > { %v856_v18 = vsel %vm832_vm0, %v840_v12, %v795_v6  ;;  %v1599_v19 = vadd.f32 %v1598_v17, %v1597_v14  ;;  %v703_v20 = vadd.f32 %v1596_v13, %v2060_v53 }
 0x122   : > { %v1775_v21 = vpop.eup %1774  ;;  %1780 = vtanh.f32 %v856_v18  ;;  %v2123_v24 = vsel %vm832_vm0, %v900_v16, %v1773_v4 }
 0x123   : > { %v800_v22 = vadd.f32 %v799_v33, %v703_v20  ;;  %v706_v23 = vadd.f32 %v1599_v19, %v2060_v53  ;;  %v885_v25 = vmul.f32 0.5, %v1775_v21 }
 0x124   : > { %v1777_v26 = vpop.eup %1776  ;;  %1047 = vrot.lane.b32.xlu1 %v2123_v24, %s1870_s25 }
 0x125   : > { %v841_v27 = vmul.f32 0.5, %v800_v22  ;;  %v803_v28 = vadd.f32 %v802_v39, %v706_v23  ;;  %v1600_v30 = vpop.f32.mrb[20].mxu0  ;;  %v901_v31 = vadd.f32 0.5, %v885_v25  ;;  %v886_v32 = vmul.f32 0.5, %v1777_v26 }
 0x126   : > { %v1601_v34 = vpop.f32.mrb[21].mxu0 }
 0x127   : > { %v857_v33 = vsel %vm832_vm0, %v841_v27, %v800_v22  ;;  %v842_v36 = vmul.f32 0.5, %v803_v28  ;;  %v1602_v37 = vadd.f32 %v1601_v34, %v1600_v30  ;;  %v1603_v38 = vpop.f32.mrb[22].mxu0  ;;  %v2131_v40 = vsel %vm832_vm0, %v901_v31, %v1775_v21 }
 0x128   : > { %1782 = vtanh.f32 %v857_v33  ;;  %v1604_v41 = vpop.f32.mrb[23].mxu0  ;;  %1049 = vrot.lane.b32.xlu0 %v2131_v40, %s1870_s25  ;;  %v902_v39 = vadd.f32 0.5, %v886_v32 }
 0x129   : > { %v858_v42 = vsel %vm832_vm0, %v842_v36, %v803_v28  ;;  %v711_v43 = vadd.f32 %v1602_v37, %v2060_v53  ;;  %v1605_v44 = vadd.f32 %v1604_v41, %v1603_v38 }
 0x12a   : > { %v1779_v45 = vpop.eup %1778  ;;  %1784 = vtanh.f32 %v858_v42  ;;  %v2140_v46 = vsel %vm832_vm0, %v902_v39, %v1777_v26 }
 0x12b   : > { %v808_v47 = vadd.f32 %v2075_v29, %v711_v43  ;;  %v714_v48 = vadd.f32 %v1605_v44, %v2060_v53  ;;  %1051 = vrot.lane.b32.xlu1 %v2140_v46, %s1870_s25  ;;  %v887_v49 = vmul.f32 0.5, %v1779_v45 }
 0x12c   : > { %v1781_v51 = vpop.eup %1780 }
 0x12d   : > { %v843_v52 = vmul.f32 0.5, %v808_v47  ;;  %v811_v54 = vadd.f32 %v2080_v35, %v714_v48  ;;  %v1606_v56 = vpop.f32.mrb[24].mxu0  ;;  %v903_v57 = vadd.f32 0.5, %v887_v49  ;;  %v888_v59 = vmul.f32 0.5, %v1781_v51 }
 0x12e   : > { %v1607_v61 = vpop.f32.mrb[25].mxu0 }
 0x12f   : > { %v859_v63 = vsel %vm832_vm0, %v843_v52, %v808_v47  ;;  %v844_v0 = vmul.f32 0.5, %v811_v54  ;;  %v1608_v2 = vadd.f32 %v1607_v61, %v1606_v56  ;;  %v1609_v29 = vpop.f32.mrb[26].mxu0  ;;  %v2151_v4 = vsel %vm832_vm0, %v903_v57, %v1779_v45 }
 0x130   : > { %1786 = vtanh.f32 %v859_v63  ;;  %v1610_v5 = vpop.f32.mrb[27].mxu0  ;;  %1053 = vrot.lane.b32.xlu0 %v2151_v4, %s1870_s25  ;;  %v904_v35 = vadd.f32 0.5, %v888_v59 }
 0x131   : > { %v860_v6 = vsel %vm832_vm0, %v844_v0, %v811_v54  ;;  %v1611_v7 = vadd.f32 %v1610_v5, %v1609_v29  ;;  %v719_v8 = vadd.f32 %v1608_v2, %v2060_v53 }
 0x132   : > { %v1783_v9 = vpop.eup %1782  ;;  %1788 = vtanh.f32 %v860_v6  ;;  %v2160_v10 = vsel %vm832_vm0, %v904_v35, %v1781_v51 }
 0x133   : > { %v816_v11 = vadd.f32 %v2096_v60, %v719_v8  ;;  %1055 = vrot.lane.b32.xlu1 %v2160_v10, %s1870_s25  ;;  %v722_v12 = vadd.f32 %v1611_v7, %v2060_v53  ;;  %v889_v13 = vmul.f32 0.5, %v1783_v9  ;;  %v931_v7 = vld [vmem:[%s2035_s24 + $0x10] sm:$0xff]  ;;  %v932_v8 = vld [vmem:[%s2035_s24 + $0x18] sm:$0xff] }
 0x134   : > { %v1785_v14 = vpop.eup %1784 }
 0x135   : > { %v845_v17 = vmul.f32 0.5, %v816_v11  ;;  %v819_v16 = vadd.f32 %v2105_v3, %v722_v12  ;;  %v1612_v18 = vpop.f32.mrb[28].mxu0  ;;  %v905_v19 = vadd.f32 0.5, %v889_v13  ;;  %v890_v20 = vmul.f32 0.5, %v1785_v14  ;;  %v936_v12 = vld [vmem:[%s2035_s24 + $0x38] sm:$0xff]  ;;  %v937_v13 = vld [vmem:[%s2035_s24 + $0x40] sm:$0xff] }
 0x136   : > { %v1613_v21 = vpop.f32.mrb[29].mxu0 }
 0x137   : > { %v861_v22 = vsel %vm832_vm0, %v845_v17, %v816_v11  ;;  %v846_v23 = vmul.f32 0.5, %v819_v16  ;;  %v1614_v25 = vadd.f32 %v1613_v21, %v1612_v18  ;;  %v1615_v60 = vpop.f32.mrb[30].mxu0  ;;  %v2171_v26 = vsel %vm832_vm0, %v905_v19, %v1783_v9  ;;  %v933_v9 = vld [vmem:[%s2035_s24 + $0x20] sm:$0xff]  ;;  %v934_v11 = vld [vmem:[%s2035_s24 + $0x28] sm:$0xff]  ;;  %v939_v17 = vld [vmem:[%s2035_s24 + $0x50] sm:$0xff] }
 0x138   : > { %1790 = vtanh.f32 %v861_v22  ;;  %v1616_v27 = vpop.f32.mrb[31].mxu0  ;;  %1057 = vrot.lane.b32.xlu0 %v2171_v26, %s1870_s25  ;;  %v906_v3 = vadd.f32 0.5, %v890_v20  ;;  %v941_v18 = vld [vmem:[%s2035_s24 + $0x60] sm:$0xff]  ;;  %v942_v19 = vld [vmem:[%s2035_s24 + $0x68] sm:$0xff]  ;;  %v943_v20 = vld [vmem:[%s2035_s24 + $0x70] sm:$0xff]  ;;  %v2255_v22 = vpop.permute.xlu0 %961 }
 0x139   : > { %v862_v28 = vsel %vm832_vm0, %v846_v23, %v819_v16  ;;  %v727_v30 = vadd.f32 %v1614_v25, %v2060_v53  ;;  %v1617_v31 = vadd.f32 %v1616_v27, %v1615_v60  ;;  %v940_v16 = vld [vmem:[%s2035_s24 + $0x58] sm:$0xff]  ;;  %v2259_v60 = vpop.permute.xlu1 %963 }
 0x13a   : > { %v1787_v32 = vpop.eup %1786  ;;  %1792 = vtanh.f32 %v862_v28  ;;  %v2180_v34 = vsel %vm832_vm0, %v906_v3, %v1785_v14  ;;  %v938_v14 = vld [vmem:[%s2035_s24 + $0x48] sm:$0xff]  ;;  %v944_v21 = vld [vmem:[%s2035_s24 + $0x78] sm:$0xff] }
 0x13b   : > { %v824_v33 = vadd.f32 %v2091_v55, %v727_v30  ;;  %v730_v36 = vadd.f32 %v1617_v31, %v2060_v53  ;;  %1059 = vrot.lane.b32.xlu1 %v2180_v34, %s1870_s25  ;;  %v891_v37 = vmul.f32 0.5, %v1787_v32 }
 0x13c   : > { %v1789_v38 = vpop.eup %1788 }
 0x13d   : > { %v847_v41 = vmul.f32 0.5, %v824_v33  ;;  %v827_v39 = vadd.f32 %v2098_v62, %v730_v36  ;;  %v907_v42 = vadd.f32 0.5, %v891_v37  ;;  %v892_v43 = vmul.f32 0.5, %v1789_v38 }
 0x13f   : > { %v863_v44 = vsel %vm832_vm0, %v847_v41, %v824_v33  ;;  %v848_v45 = vmul.f32 0.5, %v827_v39  ;;  %v2191_v47 = vsel %vm832_vm0, %v907_v42, %v1787_v32  ;;  %v908_v55 = vadd.f32 0.5, %v892_v43 }
 0x140   : > { %1794 = vtanh.f32 %v863_v44  ;;  %1061 = vrot.lane.b32.xlu0 %v2191_v47, %s1870_s25 }
 0x141   : > { %v864_v53 = vsel %vm832_vm0, %v848_v45, %v827_v39  ;;  %v2199_v62 = vsel %vm832_vm0, %v908_v55, %v1789_v38 }
 0x142   : > { %v1791_v48 = vpop.eup %1790  ;;  %1796 = vtanh.f32 %v864_v53  ;;  %1063 = vrot.lane.b32.xlu1 %v2199_v62, %s1870_s25 }
 0x143   : > { %v893_v49 = vmul.f32 0.5, %v1791_v48 }
 0x144   : > { %v1793_v51 = vpop.eup %1792 }
 0x145   : > { %v909_v52 = vadd.f32 0.5, %v893_v49  ;;  %v894_v54 = vmul.f32 0.5, %v1793_v51 }
 0x147   : > { %v2205_v56 = vsel %vm832_vm0, %v909_v52, %v1791_v48  ;;  %v910_v57 = vadd.f32 0.5, %v894_v54 }
 0x148   : > { %1065 = vrot.lane.b32.xlu0 %v2205_v56, %s1870_s25 }
 0x149   : > { %v2211_v59 = vsel %vm832_vm0, %v910_v57, %v1793_v51 }
 0x14a   : > { %v1795_v61 = vpop.eup %1794  ;;  %1067 = vrot.lane.b32.xlu1 %v2211_v59, %s1870_s25 }
 0x14b   : > { %v895_v63 = vmul.f32 0.5, %v1795_v61 }
 0x14c   : > { %v1797_v0 = vpop.eup %1796 }
 0x14d   : > { %v911_v2 = vadd.f32 0.5, %v895_v63  ;;  %v896_v29 = vmul.f32 0.5, %v1797_v0 }
 0x14f   : > { %v2217_v5 = vsel %vm832_vm0, %v911_v2, %v1795_v61  ;;  %v912_v35 = vadd.f32 0.5, %v896_v29 }
 0x150   : > { %1069 = vrot.lane.b32.xlu0 %v2217_v5, %s1870_s25 }
 0x151   : > { %v2223_v6 = vsel %vm832_vm0, %v912_v35, %v1797_v0 }
 0x152   : > { %1071 = vrot.lane.b32.xlu1 %v2223_v6, %s1870_s25 }
 0x154   : > { %965 = vrot.lane.b32.xlu0 %v931_v7, %s1870_s25 }
 0x156   : > { %967 = vrot.lane.b32.xlu1 %v932_v8, %s1870_s25 }
 0x158   : > { %969 = vrot.lane.b32.xlu0 %v933_v9, %s1870_s25 }
 0x15a   : > { %971 = vrot.lane.b32.xlu1 %v934_v11, %s1870_s25 }
 0x15c   : > { %973 = vrot.lane.b32.xlu0 %v935_v58, %s1870_s25 }
 0x15e   : > { %975 = vrot.lane.b32.xlu1 %v936_v12, %s1870_s25 }
 0x160   : > { %977 = vrot.lane.b32.xlu0 %v937_v13, %s1870_s25 }
 0x162   : > { %979 = vrot.lane.b32.xlu1 %v938_v14, %s1870_s25 }
 0x164   : > { %981 = vrot.lane.b32.xlu0 %v939_v17, %s1870_s25 }
 0x166   : > { %983 = vrot.lane.b32.xlu1 %v940_v16, %s1870_s25 }
 0x168   : > { %985 = vrot.lane.b32.xlu0 %v941_v18, %s1870_s25 }
 0x16a   : > { %987 = vrot.lane.b32.xlu1 %v942_v19, %s1870_s25 }
 0x16c   : > { %989 = vrot.lane.b32.xlu0 %v943_v20, %s1870_s25 }
 0x16e   : > { %991 = vrot.lane.b32.xlu1 %v944_v21, %s1870_s25  ;;  %v1009_v21 = vmul.f32 %v2255_v22, %v2087_v50 }
 0x18a   : > { %v1042_v23 = vpop.permute.xlu0 %1041 }
 0x18b   : > { %v1089_v25 = vmul.f32 %v1042_v23, %v2087_v50 }
 0x18d   : > { %1121 = vrot.lane.b32.xlu0 %v1089_v25, %s1870_s25 }
 0x18e   : > { %v1044_v27 = vpop.permute.xlu0 %1043 }
 0x18f   : > { %v1090_v3 = vmul.f32 %v1044_v27, %v2103_v1 }
 0x191   : > { %1123 = vrot.lane.b32.xlu1 %v1090_v3, %s1870_s25  ;;  %v1010_v3 = vmul.f32 %v2259_v60, %v2103_v1 }
 0x192   : > { %v1046_v28 = vpop.permute.xlu1 %1045 }
 0x193   : > { %v1091_v30 = vmul.f32 %v1046_v28, %v2113_v15 }
 0x195   : > { %1125 = vrot.lane.b32.xlu0 %v1091_v30, %s1870_s25 }
 0x196   : > { %v1048_v31 = vpop.permute.xlu1 %1047 }
 0x197   : > { %v1092_v32 = vmul.f32 %v1048_v31, %v2123_v24 }
 0x199   : > { %1127 = vrot.lane.b32.xlu1 %v1092_v32, %s1870_s25 }
 0x19a   : > { %v1050_v33 = vpop.permute.xlu0 %1049 }
 0x19b   : > { %v1093_v36 = vmul.f32 %v1050_v33, %v2131_v40 }
 0x19d   : > { %v1052_v37 = vpop.permute.xlu1 %1051  ;;  %1129 = vrot.lane.b32.xlu0 %v1093_v36, %s1870_s25 }
 0x19e   : > { %v1094_v38 = vmul.f32 %v1052_v37, %v2140_v46 }
 0x1a0   : > { %1131 = vrot.lane.b32.xlu1 %v1094_v38, %s1870_s25 }
 0x1a2   : > { %v1054_v41 = vpop.permute.xlu0 %1053 }
 0x1a3   : > { %v1095_v39 = vmul.f32 %v1054_v41, %v2151_v4 }
 0x1a5   : > { %v1056_v42 = vpop.permute.xlu1 %1055  ;;  %1133 = vrot.lane.b32.xlu0 %v1095_v39, %s1870_s25 }
 0x1a6   : > { %v1096_v43 = vmul.f32 %v1056_v42, %v2160_v10 }
 0x1a8   : > { %1135 = vrot.lane.b32.xlu1 %v1096_v43, %s1870_s25 }
 0x1aa   : > { %v1058_v44 = vpop.permute.xlu0 %1057 }
 0x1ab   : > { %v1097_v45 = vmul.f32 %v1058_v44, %v2171_v26 }
 0x1ad   : > { %v1060_v55 = vpop.permute.xlu1 %1059  ;;  %1137 = vrot.lane.b32.xlu0 %v1097_v45, %s1870_s25 }
 0x1ae   : > { %v1098_v53 = vmul.f32 %v1060_v55, %v2180_v34 }
 0x1b0   : > { %1139 = vrot.lane.b32.xlu1 %v1098_v53, %s1870_s25 }
 0x1b2   : > { %v1062_v48 = vpop.permute.xlu0 %1061 }
 0x1b3   : > { %v1099_v49 = vmul.f32 %v1062_v48, %v2191_v47 }
 0x1b4   : > { %v1064_v51 = vpop.permute.xlu1 %1063 }
 0x1b5   : > { %v1100_v52 = vmul.f32 %v1064_v51, %v2199_v62  ;;  %1141 = vrot.lane.b32.xlu0 %v1099_v49, %s1870_s25 }
 0x1b7   : > { %1143 = vrot.lane.b32.xlu1 %v1100_v52, %s1870_s25 }
 0x1ba   : > { %v1066_v54 = vpop.permute.xlu0 %1065 }
 0x1bb   : > { %v1101_v57 = vmul.f32 %v1066_v54, %v2205_v56 }
 0x1bc   : > { %v1068_v61 = vpop.permute.xlu1 %1067 }
 0x1bd   : > { %v1102_v63 = vmul.f32 %v1068_v61, %v2211_v59  ;;  %1145 = vrot.lane.b32.xlu0 %v1101_v57, %s1870_s25 }
 0x1bf   : > { %1147 = vrot.lane.b32.xlu1 %v1102_v63, %s1870_s25 }
 0x1c2   : > { %v1070_v0 = vpop.permute.xlu0 %1069 }
 0x1c3   : > { %v1103_v2 = vmul.f32 %v1070_v0, %v2217_v5 }
 0x1c4   : > { %v1072_v29 = vpop.permute.xlu1 %1071 }
 0x1c5   : > { %v1104_v35 = vmul.f32 %v1072_v29, %v2223_v6  ;;  %1149 = vrot.lane.b32.xlu0 %v1103_v2, %s1870_s25 }
 0x1c6   : > { %v966_v7 = vpop.permute.xlu0 %965 }
 0x1c7   : > { %1151 = vrot.lane.b32.xlu1 %v1104_v35, %s1870_s25  ;;  %v1011_v31 = vmul.f32 %v966_v7, %v2113_v15 }
 0x1c8   : > { %v968_v8 = vpop.permute.xlu1 %967 }
 0x1c9   : > { %v1012_v22 = vmul.f32 %v968_v8, %v2123_v24 }
 0x1ca   : > { %v970_v9 = vpop.permute.xlu0 %969 }
 0x1cb   : > { %v1013_v60 = vmul.f32 %v970_v9, %v2131_v40 }
 0x1cc   : > { %v972_v11 = vpop.permute.xlu1 %971 }
 0x1cd   : > { %v1014_v43 = vmul.f32 %v972_v11, %v2140_v46 }
 0x1ce   : > { %v974_v58 = vpop.permute.xlu0 %973 }
 0x1cf   : > { %v1015_v53 = vmul.f32 %v974_v58, %v2151_v4 }
 0x1d0   : > { %v976_v12 = vpop.permute.xlu1 %975 }
 0x1d1   : > { %v1016_v52 = vmul.f32 %v976_v12, %v2160_v10 }
 0x1d2   : > { %v978_v13 = vpop.permute.xlu0 %977 }
 0x1d3   : > { %v1017_v63 = vmul.f32 %v978_v13, %v2171_v26 }
 0x1d4   : > { %v980_v14 = vpop.permute.xlu1 %979 }
 0x1d5   : > { %v1018_v35 = vmul.f32 %v980_v14, %v2180_v34 }
 0x1d6   : > { %v982_v17 = vpop.permute.xlu0 %981 }
 0x1d7   : > { %v1019_v11 = vmul.f32 %v982_v17, %v2191_v47 }
 0x1d8   : > { %v984_v16 = vpop.permute.xlu1 %983 }
 0x1d9   : > { %v1020_v13 = vmul.f32 %v984_v16, %v2199_v62 }
 0x1da   : > { %v2291_v18 = vpop.permute.xlu0 %985 }
 0x1db   : > { %v1021_v17 = vmul.f32 %v2291_v18, %v2205_v56 }
 0x1dc   : > { %v2293_v19 = vpop.permute.xlu1 %987 }
 0x1dd   : > { %v1022_v16 = vmul.f32 %v2293_v19, %v2211_v59 }
 0x1de   : > { %v2295_v20 = vpop.permute.xlu0 %989 }
 0x1e0   : > { %v2299_v23 = vpop.permute.xlu1 %991 }
 0x1ff   : > { %v1122_v25 = vpop.permute.xlu0 %1121 }
 0x200   : > { %v2301_v27 = vadd.f32 %v1122_v25, %v1009_v21 }
 0x202   : > { %1798 = vtanh.f32 %v2301_v27 }
 0x203   : > { %v1124_v28 = vpop.permute.xlu1 %1123 }
 0x204   : > { %v2306_v30 = vadd.f32 %v1124_v28, %v1010_v3 }
 0x206   : > { %1800 = vtanh.f32 %v2306_v30 }
 0x207   : > { %v1126_v32 = vpop.permute.xlu0 %1125 }
 0x208   : > { %v2310_v33 = vadd.f32 %v1126_v32, %v1011_v31 }
 0x20a   : > { %1802 = vtanh.f32 %v2310_v33 }
 0x20b   : > { %v1128_v36 = vpop.permute.xlu1 %1127 }
 0x20c   : > { %v1799_v37 = vpop.eup %1798  ;;  %v2314_v38 = vadd.f32 %v1128_v36, %v1012_v22 }
 0x20d   : > { %1217 = vrot.lane.b32.xlu0 %v1799_v37, %s1870_s25 }
 0x20e   : > { %1804 = vtanh.f32 %v2314_v38 }
 0x20f   : > { %v1130_v41 = vpop.permute.xlu0 %1129 }
 0x210   : > { %v1801_v39 = vpop.eup %1800  ;;  %v2319_v42 = vadd.f32 %v1130_v41, %v1013_v60  ;;  %v1023_v60 = vmul.f32 %v2295_v20, %v2217_v5  ;;  %v1024_v41 = vmul.f32 %v2299_v23, %v2223_v6 }
 0x211   : > { %1219 = vrot.lane.b32.xlu1 %v1801_v39, %s1870_s25 }
 0x212   : > { %1806 = vtanh.f32 %v2319_v42  ;;  %v1132_v44 = vpop.permute.xlu1 %1131 }
 0x213   : > { %v2324_v45 = vadd.f32 %v1132_v44, %v1014_v43 }
 0x214   : > { %v1803_v55 = vpop.eup %1802 }
 0x215   : > { %1808 = vtanh.f32 %v2324_v45  ;;  %1221 = vrot.lane.b32.xlu0 %v1803_v55, %s1870_s25 }
 0x217   : > { %v1134_v48 = vpop.permute.xlu0 %1133 }
 0x218   : > { %v1805_v49 = vpop.eup %1804  ;;  %v2329_v51 = vadd.f32 %v1134_v48, %v1015_v53 }
 0x219   : > { %1223 = vrot.lane.b32.xlu1 %v1805_v49, %s1870_s25 }
 0x21a   : > { %1810 = vtanh.f32 %v2329_v51  ;;  %v1136_v54 = vpop.permute.xlu1 %1135 }
 0x21b   : > { %v2334_v57 = vadd.f32 %v1136_v54, %v1016_v52 }
 0x21c   : > { %v1807_v61 = vpop.eup %1806 }
 0x21d   : > { %1812 = vtanh.f32 %v2334_v57  ;;  %1225 = vrot.lane.b32.xlu0 %v1807_v61, %s1870_s25 }
 0x21f   : > { %v1809_v0 = vpop.eup %1808  ;;  %v1138_v2 = vpop.permute.xlu0 %1137 }
 0x220   : > { %1227 = vrot.lane.b32.xlu1 %v1809_v0, %s1870_s25  ;;  %v2340_v29 = vadd.f32 %v1138_v2, %v1017_v63 }
 0x222   : > { %1814 = vtanh.f32 %v2340_v29  ;;  %v1140_v7 = vpop.permute.xlu1 %1139 }
 0x223   : > { %v2344_v8 = vadd.f32 %v1140_v7, %v1018_v35 }
 0x224   : > { %v1811_v9 = vpop.eup %1810 }
 0x225   : > { %1816 = vtanh.f32 %v2344_v8  ;;  %1229 = vrot.lane.b32.xlu0 %v1811_v9, %s1870_s25 }
 0x227   : > { %v1813_v58 = vpop.eup %1812  ;;  %v1142_v12 = vpop.permute.xlu0 %1141 }
 0x228   : > { %1231 = vrot.lane.b32.xlu1 %v1813_v58, %s1870_s25  ;;  %v2351_v21 = vadd.f32 %v1142_v12, %v1019_v11 }
 0x229   : > { %v1144_v14 = vpop.permute.xlu1 %1143 }
 0x22a   : > { %1818 = vtanh.f32 %v2351_v21  ;;  %v2354_v25 = vadd.f32 %v1144_v14, %v1020_v13 }
 0x22c   : > { %v1815_v3 = vpop.eup %1814  ;;  %1820 = vtanh.f32 %v2354_v25 }
 0x22d   : > { %1233 = vrot.lane.b32.xlu0 %v1815_v3, %s1870_s25 }
 0x22f   : > { %v1817_v28 = vpop.eup %1816  ;;  %v1146_v31 = vpop.permute.xlu0 %1145 }
 0x230   : > { %1235 = vrot.lane.b32.xlu1 %v1817_v28, %s1870_s25  ;;  %v2363_v32 = vadd.f32 %v1146_v31, %v1021_v17 }
 0x231   : > { %v1148_v22 = vpop.permute.xlu1 %1147 }
 0x232   : > { %1822 = vtanh.f32 %v2363_v32  ;;  %v2366_v36 = vadd.f32 %v1148_v22, %v1022_v16 }
 0x234   : > { %v1819_v37 = vpop.eup %1818  ;;  %1824 = vtanh.f32 %v2366_v36 }
 0x235   : > { %1237 = vrot.lane.b32.xlu0 %v1819_v37, %s1870_s25 }
 0x236   : > { %v1821_v18 = vpop.eup %1820 }
 0x237   : > { %1239 = vrot.lane.b32.xlu1 %v1821_v18, %s1870_s25  ;;  %v1150_v19 = vpop.permute.xlu0 %1149 }
 0x238   : > { %v2375_v39 = vadd.f32 %v1150_v19, %v1023_v60 }
 0x239   : > { %v1152_v43 = vpop.permute.xlu1 %1151 }
 0x23a   : > { %1826 = vtanh.f32 %v2375_v39  ;;  %v2378_v44 = vadd.f32 %v1152_v43, %v1024_v41 }
 0x23c   : > { %v1823_v55 = vpop.eup %1822  ;;  %1828 = vtanh.f32 %v2378_v44 }
 0x23d   : > { %1241 = vrot.lane.b32.xlu0 %v1823_v55, %s1870_s25 }
 0x23e   : > { %v1825_v53 = vpop.eup %1824 }
 0x23f   : > { %1243 = vrot.lane.b32.xlu1 %v1825_v53, %s1870_s25 }
 0x244   : > { %v1827_v20 = vpop.eup %1826 }
 0x245   : > { %1245 = vrot.lane.b32.xlu0 %v1827_v20, %s1870_s25 }
 0x246   : > { %v1829_v48 = vpop.eup %1828 }
 0x247   : > { %1247 = vrot.lane.b32.xlu1 %v1829_v48, %s1870_s25 }
 0x27f   : > { %v1218_v23 = vpop.permute.xlu0 %1217 }
 0x280   : > { %v1265_v49 = vmul.f32 %v1218_v23, %v2087_v50 }
 0x282   : > { %1297 = vrot.lane.b32.xlu0 %v1265_v49, %s1871_s28 }
 0x283   : > { %v1220_v52 = vpop.permute.xlu1 %1219 }
 0x284   : > { %v1266_v54 = vmul.f32 %v1220_v52, %v2103_v1 }
 0x286   : > { %1299 = vrot.lane.b32.xlu1 %v1266_v54, %s1871_s28 }
 0x287   : > { %v1222_v61 = vpop.permute.xlu0 %1221 }
 0x288   : > { %v1267_v63 = vmul.f32 %v1222_v61, %v2113_v15 }
 0x28a   : > { %1301 = vrot.lane.b32.xlu0 %v1267_v63, %s1871_s28 }
 0x28b   : > { %v1224_v0 = vpop.permute.xlu1 %1223 }
 0x28c   : > { %v1268_v2 = vmul.f32 %v1224_v0, %v2123_v24 }
 0x28e   : > { %1303 = vrot.lane.b32.xlu1 %v1268_v2, %s1871_s28 }
 0x28f   : > { %v1226_v35 = vpop.permute.xlu0 %1225 }
 0x290   : > { %v1269_v50 = vmul.f32 %v1226_v35, %v2131_v40 }
 0x292   : > { %v1228_v7 = vpop.permute.xlu1 %1227  ;;  %1305 = vrot.lane.b32.xlu0 %v1269_v50, %s1871_s28 }
 0x293   : > { %v1270_v1 = vmul.f32 %v1228_v7, %v2140_v46 }
 0x295   : > { %1307 = vrot.lane.b32.xlu1 %v1270_v1, %s1871_s28 }
 0x297   : > { %v1230_v9 = vpop.permute.xlu0 %1229 }
 0x298   : > { %v1271_v15 = vmul.f32 %v1230_v9, %v2151_v4 }
 0x29a   : > { %v1232_v11 = vpop.permute.xlu1 %1231  ;;  %1309 = vrot.lane.b32.xlu0 %v1271_v15, %s1871_s28 }
 0x29b   : > { %v1272_v24 = vmul.f32 %v1232_v11, %v2160_v10 }
 0x29d   : > { %1311 = vrot.lane.b32.xlu1 %v1272_v24, %s1871_s28 }
 0x29f   : > { %v1234_v58 = vpop.permute.xlu0 %1233 }
 0x2a0   : > { %v1273_v40 = vmul.f32 %v1234_v58, %v2171_v26 }
 0x2a2   : > { %v1236_v12 = vpop.permute.xlu1 %1235  ;;  %1313 = vrot.lane.b32.xlu0 %v1273_v40, %s1871_s28 }
 0x2a3   : > { %v1274_v46 = vmul.f32 %v1236_v12, %v2180_v34 }
 0x2a5   : > { %1315 = vrot.lane.b32.xlu1 %v1274_v46, %s1871_s28 }
 0x2a7   : > { %v1238_v13 = vpop.permute.xlu0 %1237 }
 0x2a8   : > { %v1275_v4 = vmul.f32 %v1238_v13, %v2191_v47 }
 0x2a9   : > { %v1240_v14 = vpop.permute.xlu1 %1239 }
 0x2aa   : > { %v1276_v3 = vmul.f32 %v1240_v14, %v2199_v62  ;;  %1317 = vrot.lane.b32.xlu0 %v1275_v4, %s1871_s28 }
 0x2ac   : > { %1319 = vrot.lane.b32.xlu1 %v1276_v3, %s1871_s28 }
 0x2af   : > { %v1242_v10 = vpop.permute.xlu0 %1241 }
 0x2b0   : > { %v1277_v26 = vmul.f32 %v1242_v10, %v2205_v56 }
 0x2b1   : > { %v1244_v17 = vpop.permute.xlu1 %1243 }
 0x2b2   : > { %v1278_v28 = vmul.f32 %v1244_v17, %v2211_v59  ;;  %1321 = vrot.lane.b32.xlu0 %v1277_v26, %s1871_s28 }
 0x2b4   : > { %1323 = vrot.lane.b32.xlu1 %v1278_v28, %s1871_s28 }
 0x2b7   : > { %v1246_v34 = vpop.permute.xlu0 %1245 }
 0x2b8   : > { %v1279_v47 = vmul.f32 %v1246_v34, %v2217_v5 }
 0x2b9   : > { %v1248_v31 = vpop.permute.xlu1 %1247 }
 0x2ba   : > { %v1280_v62 = vmul.f32 %v1248_v31, %v2223_v6  ;;  %1325 = vrot.lane.b32.xlu0 %v1279_v47, %s1871_s28 }
 0x2bc   : > { %1327 = vrot.lane.b32.xlu1 %v1280_v62, %s1871_s28 }
 0x2f4   : > { %v1298_v56 = vpop.permute.xlu0 %1297 }
 0x2f5   : > { %v1346_v59 = vsel %vm1345_vm1, %v1298_v56, %v2301_v27 }
 0x2f6   : > { %1363 = vst.msk [vmem:[%s2422_s5] sm:$0xff] %vm1362_vm2, %v1346_v59 }
 0x2f8   : > { %v1300_v5 = vpop.permute.xlu1 %1299 }
 0x2f9   : > { %v1347_v6 = vsel %vm1345_vm1, %v1300_v5, %v2306_v30 }
 0x2fa   : > { %1364 = vst.msk [vmem:[%s2422_s5 + $0x8] sm:$0xff] %vm1362_vm2, %v1347_v6 }
 0x2fc   : > { %v1302_v16 = vpop.permute.xlu0 %1301 }
 0x2fd   : > { %v1348_v22 = vsel %vm1345_vm1, %v1302_v16, %v2310_v33 }
 0x2fe   : > { %1365 = vst.msk [vmem:[%s2422_s5 + $0x10] sm:$0xff] %vm1362_vm2, %v1348_v22 }
 0x300   : > { %v1304_v37 = vpop.permute.xlu1 %1303 }
 0x301   : > { %v1349_v27 = vsel %vm1345_vm1, %v1304_v37, %v2314_v38 }
 0x302   : > { %1366 = vst.msk [vmem:[%s2422_s5 + $0x18] sm:$0xff] %vm1362_vm2, %v1349_v27 }
 0x304   : > { %v1306_v18 = vpop.permute.xlu0 %1305 }
 0x305   : > { %v1350_v30 = vsel %vm1345_vm1, %v1306_v18, %v2319_v42 }
 0x306   : > { %1367 = vst.msk [vmem:[%s2422_s5 + $0x20] sm:$0xff] %vm1362_vm2, %v1350_v30 }
 0x307   : > { %v1308_v60 = vpop.permute.xlu1 %1307 }
 0x308   : > { %v1351_v33 = vsel %vm1345_vm1, %v1308_v60, %v2324_v45 }
 0x309   : > { %1368 = vst.msk [vmem:[%s2422_s5 + $0x28] sm:$0xff] %vm1362_vm2, %v1351_v33 }
 0x30c   : > { %v1310_v19 = vpop.permute.xlu0 %1309 }
 0x30d   : > { %v1352_v38 = vsel %vm1345_vm1, %v1310_v19, %v2329_v51 }
 0x30e   : > { %1369 = vst.msk [vmem:[%s2422_s5 + $0x30] sm:$0xff] %vm1362_vm2, %v1352_v38 }
 0x30f   : > { %v1312_v41 = vpop.permute.xlu1 %1311 }
 0x310   : > { %v1353_v42 = vsel %vm1345_vm1, %v1312_v41, %v2334_v57 }
 0x311   : > { %1370 = vst.msk [vmem:[%s2422_s5 + $0x38] sm:$0xff] %vm1362_vm2, %v1353_v42 }
 0x314   : > { %v1314_v43 = vpop.permute.xlu0 %1313 }
 0x315   : > { %v1354_v45 = vsel %vm1345_vm1, %v1314_v43, %v2340_v29 }
 0x316   : > { %1371 = vst.msk [vmem:[%s2422_s5 + $0x40] sm:$0xff] %vm1362_vm2, %v1354_v45 }
 0x317   : > { %v1316_v55 = vpop.permute.xlu1 %1315 }
 0x318   : > { %v1355_v51 = vsel %vm1345_vm1, %v1316_v55, %v2344_v8 }
 0x319   : > { %1372 = vst.msk [vmem:[%s2422_s5 + $0x48] sm:$0xff] %vm1362_vm2, %v1355_v51 }
 0x31c   : > { %v1318_v53 = vpop.permute.xlu0 %1317 }
 0x31d   : > { %v1356_v57 = vsel %vm1345_vm1, %v1318_v53, %v2351_v21 }
 0x31e   : > { %1373 = vst.msk [vmem:[%s2422_s5 + $0x50] sm:$0xff] %vm1362_vm2, %v1356_v57  ;;  %v1320_v20 = vpop.permute.xlu1 %1319 }
 0x31f   : > { %v1357_v29 = vsel %vm1345_vm1, %v1320_v20, %v2354_v25 }
 0x320   : > { %1374 = vst.msk [vmem:[%s2422_s5 + $0x58] sm:$0xff] %vm1362_vm2, %v1357_v29 }
 0x324   : > { %v1322_v48 = vpop.permute.xlu0 %1321 }
 0x325   : > { %v1358_v8 = vsel %vm1345_vm1, %v1322_v48, %v2363_v32 }
 0x326   : > { %1375 = vst.msk [vmem:[%s2422_s5 + $0x60] sm:$0xff] %vm1362_vm2, %v1358_v8  ;;  %v1324_v23 = vpop.permute.xlu1 %1323 }
 0x327   : > { %v1359_v49 = vsel %vm1345_vm1, %v1324_v23, %v2366_v36 }
 0x328   : > { %1376 = vst.msk [vmem:[%s2422_s5 + $0x68] sm:$0xff] %vm1362_vm2, %v1359_v49 }
 0x32c   : > { %v1326_v21 = vpop.permute.xlu0 %1325 }
 0x32d   : > { %v1360_v52 = vsel %vm1345_vm1, %v1326_v21, %v2375_v39 }
 0x32e   : > { %1377 = vst.msk [vmem:[%s2422_s5 + $0x70] sm:$0xff] %vm1362_vm2, %v1360_v52  ;;  %v1328_v25 = vpop.permute.xlu1 %1327 }
 0x32f   : > { %v1361_v54 = vsel %vm1345_vm1, %v1328_v25, %v2378_v44 }
 0x330   : > { %1378 = vst.msk [vmem:[%s2422_s5 + $0x78] sm:$0xff] %vm1362_vm2, %v1361_v54 }
 0x331 PF: > { %s14_s19 = sadd.s32 1, %s1868_s19   ;;  %s2508_s15 = smov %s1860_s17 }
 0x332   : > { %p11_p7 = scmp.ge.s32.totalorder %s14_s19, 6   ;;  %s2509_s16 = smov %s1864_s18 }
 0x333   : > { %s2510_s17 = smov %s2513_s20  ;;  %s2511_s18 = smov %s2517_s21 }
 0x334   :  { %13 = sbr.rel (!%p11_p7) target bundleno = 3 (0x3), region = 69 }

</bundles_post_ra>
